<compile_context>
chip_gen: v7x
topology: tpu7x:2x2x1
jax: 0.10.0
libtpu: 0.0.40
codegen_flags: <defaults>
</compile_context>

<pallas_src>
import jax
import jax.numpy as jnp
from jax.experimental import pallas as pl
from jax.experimental.pallas import tpu as pltpu


def _round_up(x, m):
    return (x + m - 1) // m * m


def _pad_feature(d):
    # v6e/v7x MXU passes are 2x256^2: pad K/N to 256 once the real dim is big
    # enough to benefit; stay at 128 (v5e-native) for small dims.
    return _round_up(d, 256) if d > 128 else _round_up(d, 128)


def mlp_kernel(x_ref, w1_ref, b1_ref, w2_ref, b2_ref, w3_ref, b3_ref,
               w4_ref, b4_ref, o_ref):
    # Layer 1: Linear (bf16 MXU, f32 acc) + ReLU (f32); Dropout = identity (eval)
    h = jnp.dot(x_ref[...], w1_ref[...],
                preferred_element_type=jnp.float32) + b1_ref[...]
    h = jnp.maximum(h, 0.0).astype(jnp.bfloat16)
    # Layer 2: Linear + ReLU (+ Dropout identity)
    h = jnp.dot(h, w2_ref[...],
                preferred_element_type=jnp.float32) + b2_ref[...]
    h = jnp.maximum(h, 0.0).astype(jnp.bfloat16)
    # Layer 3: Linear + ReLU (+ Dropout identity)
    h = jnp.dot(h, w3_ref[...],
                preferred_element_type=jnp.float32) + b3_ref[...]
    h = jnp.maximum(h, 0.0).astype(jnp.bfloat16)
    # Layer 4: Linear + Sigmoid (f32 elementwise -> EUP), store lane-dense bf16
    logits = jnp.dot(h, w4_ref[...],
                     preferred_element_type=jnp.float32) + b4_ref[...]
    o_ref[...] = jax.nn.sigmoid(logits).astype(o_ref.dtype)


def mlp_forward(x, params, *, tb=256, out_dtype=jnp.bfloat16):
    """x: [B, no_features] f32. params: dict of (w1,b1,...,w4,b4), weights [in,out]."""
    w1, b1, w2, b2, w3, b3, w4, b4 = (
        params["w1"], params["b1"], params["w2"], params["b2"],
        params["w3"], params["b3"], params["w4"], params["b4"])

    B, F = x.shape
    H = w1.shape[1]
    L = w4.shape[1]

    # Lane-/sublane-friendly padded dims.
    Fp = _pad_feature(F)
    Hp = _pad_feature(H)
    Lp = _round_up(L, 128)

    # Batch tile: multiple of 16 (bf16 sublane packing), sanitized tb.
    TB = _round_up(max(min(tb, B), 1), 16)
    Bp = _round_up(B, TB)
    # Guarantee >= 2 grid steps when the batch allows it (v7x megacore sharding).
    if Bp // TB < 2 and B > 16:
        TB = _round_up(-(-B // 2), 16)
        Bp = _round_up(B, TB)
    grid = (Bp // TB,)

    bf16 = jnp.bfloat16

    def pad2(a, rows, cols, dtype):
        return jnp.pad(a, ((0, rows - a.shape[0]), (0, cols - a.shape[1]))
                       ).astype(dtype)

    # Zero padding is semantics-preserving: padded input features multiply
    # zero weight rows; padded hidden units get bias 0 -> ReLU 0; padded
    # label lanes are sliced off below.
    xp = pad2(x, Bp, Fp, bf16)
    w1p, b1p = pad2(w1, Fp, Hp, bf16), pad2(b1, 1, Hp, jnp.float32)
    w2p, b2p = pad2(w2, Hp, Hp, bf16), pad2(b2, 1, Hp, jnp.float32)
    w3p, b3p = pad2(w3, Hp, Hp, bf16), pad2(b3, 1, Hp, jnp.float32)
    w4p, b4p = pad2(w4, Hp, Lp, bf16), pad2(b4, 1, Lp, jnp.float32)

    out_itemsize = jnp.finfo(out_dtype).bits // 8

    # VMEM budget: single-buffered weights/biases + double-buffered x/out
    # tiles + headroom for f32 intermediates.  Clamp to [32 MiB, 100 MiB]
    # (v7x has only 64 MiB physical; at these all-resident sizes we stay well
    # under it -- a per-layer K/N-tiled design would be needed for H >= 4096).
    weight_bytes = 2 * (w1p.size + w2p.size + w3p.size + w4p.size)
    bias_bytes = 4 * (b1p.size + b2p.size + b3p.size + b4p.size)
    stream_bytes = 2 * TB * Fp * 2 + 2 * TB * Lp * out_itemsize
    vmem_needed = weight_bytes + bias_bytes + stream_bytes + 2 * TB * Hp * 4
    vmem_limit = int(min(max(2 * vmem_needed, 32 * 2**20), 100 * 2**20))

    flops = 2 * Bp * (Fp * Hp + 2 * Hp * Hp + Hp * Lp)
    bytes_accessed = (xp.size * 2 + weight_bytes + bias_bytes
                      + Bp * Lp * out_itemsize)
    cost = pl.CostEstimate(flops=flops,
                           transcendentals=Bp * Lp,
                           bytes_accessed=bytes_accessed)

    def run(single_buffer_weights):
        if single_buffer_weights:
            def const_spec(shape):
                # Constant index_map -> DMA'd once, VMEM-resident; single
                # buffer (no point double-buffering a block that never changes).
                return pl.BlockSpec(shape, lambda i: (0, 0),
                                    pipeline_mode=pl.Buffered(1))
        else:
            def const_spec(shape):
                return pl.BlockSpec(shape, lambda i: (0, 0))

        in_specs = [
            pl.BlockSpec((TB, Fp), lambda i: (i, 0)),        # x: batch-tiled
            const_spec((Fp, Hp)), const_spec((1, Hp)),       # w1, b1
            const_spec((Hp, Hp)), const_spec((1, Hp)),       # w2, b2
            const_spec((Hp, Hp)), const_spec((1, Hp)),       # w3, b3
            const_spec((Hp, Lp)), const_spec((1, Lp)),       # w4, b4
        ]
        out_spec = pl.BlockSpec((TB, Lp), lambda i: (i, 0))  # lane-dense output

        return pl.pallas_call(
            mlp_kernel,
            out_shape=jax.ShapeDtypeStruct((Bp, Lp), out_dtype),
            grid=grid,
            in_specs=in_specs,
            out_specs=out_spec,
            compiler_params=pltpu.CompilerParams(
                dimension_semantics=("parallel",),
                vmem_limit_bytes=vmem_limit,
            ),
            cost_estimate=cost,
        )(xp, w1p, b1p, w2p, b2p, w3p, b3p, w4p, b4p)

    try:
        out_p = run(single_buffer_weights=True)
    except Exception:
        # Fallback for jax versions that reject pipeline_mode=pl.Buffered(1).
        out_p = run(single_buffer_weights=False)

    return out_p[:B, :L]


def init_params(key, no_features, no_hidden, no_labels):
    """Deterministic init mimicking nn.Linear's U(-1/sqrt(fan_in), 1/sqrt(fan_in))."""
    ks = jax.random.split(key, 8)

    def linear(kw, kb, fan_in, fan_out):
        bound = 1.0 / jnp.sqrt(jnp.float32(fan_in))
        w = jax.random.uniform(kw, (fan_in, fan_out), jnp.float32, -bound, bound)
        b = jax.random.uniform(kb, (1, fan_out), jnp.float32, -bound, bound)
        return w, b

    w1, b1 = linear(ks[0], ks[1], no_features, no_hidden)
    w2, b2 = linear(ks[2], ks[3], no_hidden, no_hidden)
    w3, b3 = linear(ks[4], ks[5], no_hidden, no_hidden)
    w4, b4 = linear(ks[6], ks[7], no_hidden, no_labels)
    return dict(w1=w1, b1=b1, w2=w2, b2=b2, w3=w3, b3=b3, w4=w4, b4=b4)


def mlp_reference_f32(x, p):
    h = jnp.maximum(x @ p["w1"] + p["b1"], 0.0)
    h = jnp.maximum(h @ p["w2"] + p["b2"], 0.0)
    h = jnp.maximum(h @ p["w3"] + p["b3"], 0.0)
    return jax.nn.sigmoid(h @ p["w4"] + p["b4"])


def mlp_reference_bf16(x, p):
    """Pure-JAX reference matching the kernel's bf16-in / f32-acc precision."""
    bf = jnp.bfloat16

    def lin(h, w, b):
        return jnp.dot(h.astype(bf), w.astype(bf),
                       preferred_element_type=jnp.float32) + b

    h = jnp.maximum(lin(x, p["w1"], p["b1"]), 0.0)
    h = jnp.maximum(lin(h, p["w2"], p["b2"]), 0.0)
    h = jnp.maximum(lin(h, p["w3"], p["b3"]), 0.0)
    return jax.nn.sigmoid(lin(h, p["w4"], p["b4"]))


if __name__ == "__main__":
    key = jax.random.PRNGKey(0)
    kx, kp, kx2, kp2 = jax.random.split(key, 4)

    # Small shapes matching the module's toy configuration.
    batch, no_features, no_hidden, no_labels = 8, 16, 32, 4
    x = jax.random.normal(kx, (batch, no_features), jnp.float32)
    params = init_params(kp, no_features, no_hidden, no_labels)

    out = jax.block_until_ready(mlp_forward(x, params)).astype(jnp.float32)
    assert out.shape == (batch, no_labels)

    ref_matched = mlp_reference_bf16(x, params)   # same precision as kernel
    ref_f32 = mlp_reference_f32(x, params)        # module's native f32 math
    assert jnp.allclose(out, ref_matched, atol=1e-2, rtol=1e-2)
    assert jnp.allclose(out, ref_f32, atol=3e-2)  # bf16 MXU inputs, f32 acc

    # Larger config: exercises the multi-step grid (>=2 tiles), 256-padded
    # hidden dim and single-buffered resident weights.
    b2_, f2_, h2_, l2_ = 320, 64, 256, 4
    x2 = jax.random.normal(kx2, (b2_, f2_), jnp.float32)
    params2 = init_params(kp2, f2_, h2_, l2_)
    out2 = jax.block_until_ready(mlp_forward(x2, params2)).astype(jnp.float32)
    assert out2.shape == (b2_, l2_)
    assert jnp.allclose(out2, mlp_reference_bf16(x2, params2), atol=1e-2, rtol=1e-2)

    print("KERNEL_OK")
</pallas_src>

<mosaic_0001>
module attributes {stable_mosaic.version = 11 : i64} {
  func.func @mlp_kernel(%arg0: i32, %arg1: memref<16x128xbf16, #tpu.memory_space<vmem>>, %arg2: memref<128x128xbf16, #tpu.memory_space<vmem>>, %arg3: memref<1x128xf32, #tpu.memory_space<vmem>>, %arg4: memref<128x128xbf16, #tpu.memory_space<vmem>>, %arg5: memref<1x128xf32, #tpu.memory_space<vmem>>, %arg6: memref<128x128xbf16, #tpu.memory_space<vmem>>, %arg7: memref<1x128xf32, #tpu.memory_space<vmem>>, %arg8: memref<128x128xbf16, #tpu.memory_space<vmem>>, %arg9: memref<1x128xf32, #tpu.memory_space<vmem>>, %arg10: memref<16x128xbf16, #tpu.memory_space<vmem>>) attributes {dimension_semantics = [#tpu.dimension_semantics<parallel>], iteration_bounds = array<i64: 1>, scalar_prefetch = 0 : i64, scratch_operands = 0 : i64, tpu.core_type = #tpu.core_type<tc>, window_params = [{transform_indices = @transform_0, window_bounds = array<i64: 16, 128>}, {pipeline_mode = #tpu.pipeline_mode<synchronous>, transform_indices = @transform_1, window_bounds = array<i64: 128, 128>}, {pipeline_mode = #tpu.pipeline_mode<synchronous>, transform_indices = @transform_2, window_bounds = array<i64: 1, 128>}, {pipeline_mode = #tpu.pipeline_mode<synchronous>, transform_indices = @transform_3, window_bounds = array<i64: 128, 128>}, {pipeline_mode = #tpu.pipeline_mode<synchronous>, transform_indices = @transform_4, window_bounds = array<i64: 1, 128>}, {pipeline_mode = #tpu.pipeline_mode<synchronous>, transform_indices = @transform_5, window_bounds = array<i64: 128, 128>}, {pipeline_mode = #tpu.pipeline_mode<synchronous>, transform_indices = @transform_6, window_bounds = array<i64: 1, 128>}, {pipeline_mode = #tpu.pipeline_mode<synchronous>, transform_indices = @transform_7, window_bounds = array<i64: 128, 128>}, {pipeline_mode = #tpu.pipeline_mode<synchronous>, transform_indices = @transform_8, window_bounds = array<i64: 1, 128>}, {transform_indices = @transform_9, window_bounds = array<i64: 16, 128>}]} {
    %c0 = arith.constant 0 : index
    %c0_0 = arith.constant 0 : index
    %0 = vector.load %arg1[%c0, %c0_0] : memref<16x128xbf16, #tpu.memory_space<vmem>>, vector<16x128xbf16>
    %c0_1 = arith.constant 0 : index
    %c0_2 = arith.constant 0 : index
    %1 = vector.load %arg2[%c0_1, %c0_2] : memref<128x128xbf16, #tpu.memory_space<vmem>>, vector<128x128xbf16>
    %cst = arith.constant dense<0.000000e+00> : vector<16x128xf32>
    %2 = tpu.matmul %0, %1, %cst {dimension_numbers = #tpu.dot_dimension_numbers<[1], [0], [0], [1], [0, 0, 1, 1], [], []>} : vector<16x128xbf16>, vector<128x128xbf16>, vector<16x128xf32> -> vector<16x128xf32>
    %c0_3 = arith.constant 0 : index
    %c0_4 = arith.constant 0 : index
    %3 = vector.load %arg3[%c0_3, %c0_4] : memref<1x128xf32, #tpu.memory_space<vmem>>, vector<1x128xf32>
    %4 = vector.broadcast %3 : vector<1x128xf32> to vector<16x128xf32>
    %5 = arith.addf %2, %4 : vector<16x128xf32>
    %cst_5 = arith.constant 0.000000e+00 : f32
    %6 = vector.broadcast %cst_5 : f32 to vector<16x128xf32>
    %7 = arith.maximumf %5, %6 : vector<16x128xf32>
    %8 = arith.truncf %7 : vector<16x128xf32> to vector<16x128xbf16>
    %c0_6 = arith.constant 0 : index
    %c0_7 = arith.constant 0 : index
    %9 = vector.load %arg4[%c0_6, %c0_7] : memref<128x128xbf16, #tpu.memory_space<vmem>>, vector<128x128xbf16>
    %cst_8 = arith.constant dense<0.000000e+00> : vector<16x128xf32>
    %10 = tpu.matmul %8, %9, %cst_8 {dimension_numbers = #tpu.dot_dimension_numbers<[1], [0], [0], [1], [0, 0, 1, 1], [], []>} : vector<16x128xbf16>, vector<128x128xbf16>, vector<16x128xf32> -> vector<16x128xf32>
    %c0_9 = arith.constant 0 : index
    %c0_10 = arith.constant 0 : index
    %11 = vector.load %arg5[%c0_9, %c0_10] : memref<1x128xf32, #tpu.memory_space<vmem>>, vector<1x128xf32>
    %12 = vector.broadcast %11 : vector<1x128xf32> to vector<16x128xf32>
    %13 = arith.addf %10, %12 : vector<16x128xf32>
    %cst_11 = arith.constant 0.000000e+00 : f32
    %14 = vector.broadcast %cst_11 : f32 to vector<16x128xf32>
    %15 = arith.maximumf %13, %14 : vector<16x128xf32>
    %16 = arith.truncf %15 : vector<16x128xf32> to vector<16x128xbf16>
    %c0_12 = arith.constant 0 : index
    %c0_13 = arith.constant 0 : index
    %17 = vector.load %arg6[%c0_12, %c0_13] : memref<128x128xbf16, #tpu.memory_space<vmem>>, vector<128x128xbf16>
    %cst_14 = arith.constant dense<0.000000e+00> : vector<16x128xf32>
    %18 = tpu.matmul %16, %17, %cst_14 {dimension_numbers = #tpu.dot_dimension_numbers<[1], [0], [0], [1], [0, 0, 1, 1], [], []>} : vector<16x128xbf16>, vector<128x128xbf16>, vector<16x128xf32> -> vector<16x128xf32>
    %c0_15 = arith.constant 0 : index
    %c0_16 = arith.constant 0 : index
    %19 = vector.load %arg7[%c0_15, %c0_16] : memref<1x128xf32, #tpu.memory_space<vmem>>, vector<1x128xf32>
    %20 = vector.broadcast %19 : vector<1x128xf32> to vector<16x128xf32>
    %21 = arith.addf %18, %20 : vector<16x128xf32>
    %cst_17 = arith.constant 0.000000e+00 : f32
    %22 = vector.broadcast %cst_17 : f32 to vector<16x128xf32>
    %23 = arith.maximumf %21, %22 : vector<16x128xf32>
    %24 = arith.truncf %23 : vector<16x128xf32> to vector<16x128xbf16>
    %c0_18 = arith.constant 0 : index
    %c0_19 = arith.constant 0 : index
    %25 = vector.load %arg8[%c0_18, %c0_19] : memref<128x128xbf16, #tpu.memory_space<vmem>>, vector<128x128xbf16>
    %cst_20 = arith.constant dense<0.000000e+00> : vector<16x128xf32>
    %26 = tpu.matmul %24, %25, %cst_20 {dimension_numbers = #tpu.dot_dimension_numbers<[1], [0], [0], [1], [0, 0, 1, 1], [], []>} : vector<16x128xbf16>, vector<128x128xbf16>, vector<16x128xf32> -> vector<16x128xf32>
    %c0_21 = arith.constant 0 : index
    %c0_22 = arith.constant 0 : index
    %27 = vector.load %arg9[%c0_21, %c0_22] : memref<1x128xf32, #tpu.memory_space<vmem>>, vector<1x128xf32>
    %28 = vector.broadcast %27 : vector<1x128xf32> to vector<16x128xf32>
    %29 = arith.addf %26, %28 : vector<16x128xf32>
    %30 = arith.negf %29 : vector<16x128xf32>
    %31 = math.exp %30 : vector<16x128xf32>
    %cst_23 = arith.constant 1.000000e+00 : f32
    %32 = vector.broadcast %cst_23 : f32 to vector<16x128xf32>
    %33 = arith.addf %32, %31 : vector<16x128xf32>
    %34 = arith.divf %32, %33 : vector<16x128xf32>
    %35 = arith.truncf %34 : vector<16x128xf32> to vector<16x128xbf16>
    %c0_24 = arith.constant 0 : index
    %c0_25 = arith.constant 0 : index
    %36 = vector.load %arg10[%c0_24, %c0_25] : memref<16x128xbf16, #tpu.memory_space<vmem>>, vector<16x128xbf16>
    tpu.vector_store %arg10[%c0_24, %c0_25], %35 {strides = array<i32>} : memref<16x128xbf16, #tpu.memory_space<vmem>>, vector<16x128xbf16>,
    return
  }
  func.func @transform_0(%arg0: i32) -> (i32, i32) {
    %c0_i32 = arith.constant 0 : i32
    %c0_i32_0 = arith.constant 0 : i32
    return %arg0, %c0_i32 : i32, i32
  }
  func.func @transform_1(%arg0: i32) -> (i32, i32) {
    %c0_i32 = arith.constant 0 : i32
    %c0_i32_0 = arith.constant 0 : i32
    %c0_i32_1 = arith.constant 0 : i32
    return %c0_i32, %c0_i32_0 : i32, i32
  }
  func.func @transform_2(%arg0: i32) -> (i32, i32) {
    %c0_i32 = arith.constant 0 : i32
    %c0_i32_0 = arith.constant 0 : i32
    %c0_i32_1 = arith.constant 0 : i32
    return %c0_i32, %c0_i32_0 : i32, i32
  }
  func.func @transform_3(%arg0: i32) -> (i32, i32) {
    %c0_i32 = arith.constant 0 : i32
    %c0_i32_0 = arith.constant 0 : i32
    %c0_i32_1 = arith.constant 0 : i32
    return %c0_i32, %c0_i32_0 : i32, i32
  }
  func.func @transform_4(%arg0: i32) -> (i32, i32) {
    %c0_i32 = arith.constant 0 : i32
    %c0_i32_0 = arith.constant 0 : i32
    %c0_i32_1 = arith.constant 0 : i32
    return %c0_i32, %c0_i32_0 : i32, i32
  }
  func.func @transform_5(%arg0: i32) -> (i32, i32) {
    %c0_i32 = arith.constant 0 : i32
    %c0_i32_0 = arith.constant 0 : i32
    %c0_i32_1 = arith.constant 0 : i32
    return %c0_i32, %c0_i32_0 : i32, i32
  }
  func.func @transform_6(%arg0: i32) -> (i32, i32) {
    %c0_i32 = arith.constant 0 : i32
    %c0_i32_0 = arith.constant 0 : i32
    %c0_i32_1 = arith.constant 0 : i32
    return %c0_i32, %c0_i32_0 : i32, i32
  }
  func.func @transform_7(%arg0: i32) -> (i32, i32) {
    %c0_i32 = arith.constant 0 : i32
    %c0_i32_0 = arith.constant 0 : i32
    %c0_i32_1 = arith.constant 0 : i32
    return %c0_i32, %c0_i32_0 : i32, i32
  }
  func.func @transform_8(%arg0: i32) -> (i32, i32) {
    %c0_i32 = arith.constant 0 : i32
    %c0_i32_0 = arith.constant 0 : i32
    %c0_i32_1 = arith.constant 0 : i32
    return %c0_i32, %c0_i32_0 : i32, i32
  }
  func.func @transform_9(%arg0: i32) -> (i32, i32) {
    %c0_i32 = arith.constant 0 : i32
    %c0_i32_0 = arith.constant 0 : i32
    return %arg0, %c0_i32 : i32, i32
  }
}

module attributes {stable_mosaic.version = 11 : i64} {
  func.func @mlp_kernel(%arg0: i32, %arg1: memref<16x128xbf16, #tpu.memory_space<vmem>>, %arg2: memref<128x128xbf16, #tpu.memory_space<vmem>>, %arg3: memref<1x128xf32, #tpu.memory_space<vmem>>, %arg4: memref<128x128xbf16, #tpu.memory_space<vmem>>, %arg5: memref<1x128xf32, #tpu.memory_space<vmem>>, %arg6: memref<128x128xbf16, #tpu.memory_space<vmem>>, %arg7: memref<1x128xf32, #tpu.memory_space<vmem>>, %arg8: memref<128x128xbf16, #tpu.memory_space<vmem>>, %arg9: memref<1x128xf32, #tpu.memory_space<vmem>>, %arg10: memref<16x128xbf16, #tpu.memory_space<vmem>>) attributes {dimension_semantics = [#tpu.dimension_semantics<parallel>], iteration_bounds = array<i64: 1>, scalar_prefetch = 0 : i64, scratch_operands = 0 : i64, tpu.core_type = #tpu.core_type<tc>, window_params = [{transform_indices = @transform_0, window_bounds = array<i64: 16, 128>}, {pipeline_mode = #tpu.pipeline_mode<synchronous>, transform_indices = @transform_1, window_bounds = array<i64: 128, 128>}, {pipeline_mode = #tpu.pipeline_mode<synchronous>, transform_indices = @transform_2, window_bounds = array<i64: 1, 128>}, {pipeline_mode = #tpu.pipeline_mode<synchronous>, transform_indices = @transform_3, window_bounds = array<i64: 128, 128>}, {pipeline_mode = #tpu.pipeline_mode<synchronous>, transform_indices = @transform_4, window_bounds = array<i64: 1, 128>}, {pipeline_mode = #tpu.pipeline_mode<synchronous>, transform_indices = @transform_5, window_bounds = array<i64: 128, 128>}, {pipeline_mode = #tpu.pipeline_mode<synchronous>, transform_indices = @transform_6, window_bounds = array<i64: 1, 128>}, {pipeline_mode = #tpu.pipeline_mode<synchronous>, transform_indices = @transform_7, window_bounds = array<i64: 128, 128>}, {pipeline_mode = #tpu.pipeline_mode<synchronous>, transform_indices = @transform_8, window_bounds = array<i64: 1, 128>}, {transform_indices = @transform_9, window_bounds = array<i64: 16, 128>}]} {
    %c0 = arith.constant 0 : index
    %c0_0 = arith.constant 0 : index
    %0 = vector.load %arg1[%c0, %c0_0] : memref<16x128xbf16, #tpu.memory_space<vmem>>, vector<16x128xbf16>
    %c0_1 = arith.constant 0 : index
    %c0_2 = arith.constant 0 : index
    %1 = vector.load %arg2[%c0_1, %c0_2] : memref<128x128xbf16, #tpu.memory_space<vmem>>, vector<128x128xbf16>
    %cst = arith.constant dense<0.000000e+00> : vector<16x128xf32>
    %2 = tpu.matmul %0, %1, %cst {dimension_numbers = #tpu.dot_dimension_numbers<[1], [0], [0], [1], [0, 0, 1, 1], [], []>} : vector<16x128xbf16>, vector<128x128xbf16>, vector<16x128xf32> -> vector<16x128xf32>
    %c0_3 = arith.constant 0 : index
    %c0_4 = arith.constant 0 : index
    %3 = vector.load %arg3[%c0_3, %c0_4] : memref<1x128xf32, #tpu.memory_space<vmem>>, vector<1x128xf32>
    %4 = vector.broadcast %3 : vector<1x128xf32> to vector<16x128xf32>
    %5 = arith.addf %2, %4 : vector<16x128xf32>
    %cst_5 = arith.constant 0.000000e+00 : f32
    %6 = vector.broadcast %cst_5 : f32 to vector<16x128xf32>
    %7 = arith.maximumf %5, %6 : vector<16x128xf32>
    %8 = arith.truncf %7 : vector<16x128xf32> to vector<16x128xbf16>
    %c0_6 = arith.constant 0 : index
    %c0_7 = arith.constant 0 : index
    %9 = vector.load %arg4[%c0_6, %c0_7] : memref<128x128xbf16, #tpu.memory_space<vmem>>, vector<128x128xbf16>
    %cst_8 = arith.constant dense<0.000000e+00> : vector<16x128xf32>
    %10 = tpu.matmul %8, %9, %cst_8 {dimension_numbers = #tpu.dot_dimension_numbers<[1], [0], [0], [1], [0, 0, 1, 1], [], []>} : vector<16x128xbf16>, vector<128x128xbf16>, vector<16x128xf32> -> vector<16x128xf32>
    %c0_9 = arith.constant 0 : index
    %c0_10 = arith.constant 0 : index
    %11 = vector.load %arg5[%c0_9, %c0_10] : memref<1x128xf32, #tpu.memory_space<vmem>>, vector<1x128xf32>
    %12 = vector.broadcast %11 : vector<1x128xf32> to vector<16x128xf32>
    %13 = arith.addf %10, %12 : vector<16x128xf32>
    %cst_11 = arith.constant 0.000000e+00 : f32
    %14 = vector.broadcast %cst_11 : f32 to vector<16x128xf32>
    %15 = arith.maximumf %13, %14 : vector<16x128xf32>
    %16 = arith.truncf %15 : vector<16x128xf32> to vector<16x128xbf16>
    %c0_12 = arith.constant 0 : index
    %c0_13 = arith.constant 0 : index
    %17 = vector.load %arg6[%c0_12, %c0_13] : memref<128x128xbf16, #tpu.memory_space<vmem>>, vector<128x128xbf16>
    %cst_14 = arith.constant dense<0.000000e+00> : vector<16x128xf32>
    %18 = tpu.matmul %16, %17, %cst_14 {dimension_numbers = #tpu.dot_dimension_numbers<[1], [0], [0], [1], [0, 0, 1, 1], [], []>} : vector<16x128xbf16>, vector<128x128xbf16>, vector<16x128xf32> -> vector<16x128xf32>
    %c0_15 = arith.constant 0 : index
    %c0_16 = arith.constant 0 : index
    %19 = vector.load %arg7[%c0_15, %c0_16] : memref<1x128xf32, #tpu.memory_space<vmem>>, vector<1x128xf32>
    %20 = vector.broadcast %19 : vector<1x128xf32> to vector<16x128xf32>
    %21 = arith.addf %18, %20 : vector<16x128xf32>
    %cst_17 = arith.constant 0.000000e+00 : f32
    %22 = vector.broadcast %cst_17 : f32 to vector<16x128xf32>
    %23 = arith.maximumf %21, %22 : vector<16x128xf32>
    %24 = arith.truncf %23 : vector<16x128xf32> to vector<16x128xbf16>
    %c0_18 = arith.constant 0 : index
    %c0_19 = arith.constant 0 : index
    %25 = vector.load %arg8[%c0_18, %c0_19] : memref<128x128xbf16, #tpu.memory_space<vmem>>, vector<128x128xbf16>
    %cst_20 = arith.constant dense<0.000000e+00> : vector<16x128xf32>
    %26 = tpu.matmul %24, %25, %cst_20 {dimension_numbers = #tpu.dot_dimension_numbers<[1], [0], [0], [1], [0, 0, 1, 1], [], []>} : vector<16x128xbf16>, vector<128x128xbf16>, vector<16x128xf32> -> vector<16x128xf32>
    %c0_21 = arith.constant 0 : index
    %c0_22 = arith.constant 0 : index
    %27 = vector.load %arg9[%c0_21, %c0_22] : memref<1x128xf32, #tpu.memory_space<vmem>>, vector<1x128xf32>
    %28 = vector.broadcast %27 : vector<1x128xf32> to vector<16x128xf32>
    %29 = arith.addf %26, %28 : vector<16x128xf32>
    %30 = arith.negf %29 : vector<16x128xf32>
    %31 = math.exp %30 : vector<16x128xf32>
    %cst_23 = arith.constant 1.000000e+00 : f32
    %32 = vector.broadcast %cst_23 : f32 to vector<16x128xf32>
    %33 = arith.addf %32, %31 : vector<16x128xf32>
    %34 = arith.divf %32, %33 : vector<16x128xf32>
    %35 = arith.truncf %34 : vector<16x128xf32> to vector<16x128xbf16>
    %c0_24 = arith.constant 0 : index
    %c0_25 = arith.constant 0 : index
    %36 = vector.load %arg10[%c0_24, %c0_25] : memref<16x128xbf16, #tpu.memory_space<vmem>>, vector<16x128xbf16>
    tpu.vector_store %arg10[%c0_24, %c0_25], %35 {strides = array<i32>} : memref<16x128xbf16, #tpu.memory_space<vmem>>, vector<16x128xbf16>,
    return
  }
  func.func @transform_0(%arg0: i32) -> (i32, i32) {
    %c0_i32 = arith.constant 0 : i32
    %c0_i32_0 = arith.constant 0 : i32
    return %arg0, %c0_i32 : i32, i32
  }
  func.func @transform_1(%arg0: i32) -> (i32, i32) {
    %c0_i32 = arith.constant 0 : i32
    %c0_i32_0 = arith.constant 0 : i32
    %c0_i32_1 = arith.constant 0 : i32
    return %c0_i32, %c0_i32_0 : i32, i32
  }
  func.func @transform_2(%arg0: i32) -> (i32, i32) {
    %c0_i32 = arith.constant 0 : i32
    %c0_i32_0 = arith.constant 0 : i32
    %c0_i32_1 = arith.constant 0 : i32
    return %c0_i32, %c0_i32_0 : i32, i32
  }
  func.func @transform_3(%arg0: i32) -> (i32, i32) {
    %c0_i32 = arith.constant 0 : i32
    %c0_i32_0 = arith.constant 0 : i32
    %c0_i32_1 = arith.constant 0 : i32
    return %c0_i32, %c0_i32_0 : i32, i32
  }
  func.func @transform_4(%arg0: i32) -> (i32, i32) {
    %c0_i32 = arith.constant 0 : i32
    %c0_i32_0 = arith.constant 0 : i32
    %c0_i32_1 = arith.constant 0 : i32
    return %c0_i32, %c0_i32_0 : i32, i32
  }
  func.func @transform_5(%arg0: i32) -> (i32, i32) {
    %c0_i32 = arith.constant 0 : i32
    %c0_i32_0 = arith.constant 0 : i32
    %c0_i32_1 = arith.constant 0 : i32
    return %c0_i32, %c0_i32_0 : i32, i32
  }
  func.func @transform_6(%arg0: i32) -> (i32, i32) {
    %c0_i32 = arith.constant 0 : i32
    %c0_i32_0 = arith.constant 0 : i32
    %c0_i32_1 = arith.constant 0 : i32
    return %c0_i32, %c0_i32_0 : i32, i32
  }
  func.func @transform_7(%arg0: i32) -> (i32, i32) {
    %c0_i32 = arith.constant 0 : i32
    %c0_i32_0 = arith.constant 0 : i32
    %c0_i32_1 = arith.constant 0 : i32
    return %c0_i32, %c0_i32_0 : i32, i32
  }
  func.func @transform_8(%arg0: i32) -> (i32, i32) {
    %c0_i32 = arith.constant 0 : i32
    %c0_i32_0 = arith.constant 0 : i32
    %c0_i32_1 = arith.constant 0 : i32
    return %c0_i32, %c0_i32_0 : i32, i32
  }
  func.func @transform_9(%arg0: i32) -> (i32, i32) {
    %c0_i32 = arith.constant 0 : i32
    %c0_i32_0 = arith.constant 0 : i32
    return %arg0, %c0_i32 : i32, i32
  }
}

</mosaic_0001>

<bundles_post_ra>
// kernel: tpu_custom_call.1
= control target key start
LH: loop header
LB: loop body
LE: loop exit
PB: predicated region body
PF: predicated region fallthrough
CT: control target
= control target key end

     0   :  { %14 = vsyncpa [#allocation3], 0  ;;  %s1179_s0 = inlined_call_operand.hbm [shape: bf16[16,128], index: 0, kind: input, shape index: {}]   ;;  %s1180_s1 = inlined_call_operand.hbm [shape: bf16[128,128], index: 1, kind: input, shape index: {}]   ;;  %s1181_s2 = inlined_call_operand.vmem [shape: f32[1,128], index: 2, kind: input, shape index: {}]   ;;  %s1182_s3 = inlined_call_operand.hbm [shape: bf16[128,128], index: 3, kind: input, shape index: {}]   ;;  %s1183_s4 = inlined_call_operand.vmem [shape: f32[1,128], index: 4, kind: input, shape index: {}]   ;;  %s1184_s5 = inlined_call_operand.hbm [shape: bf16[128,128], index: 5, kind: input, shape index: {}]   ;;  %s1185_s6 = inlined_call_operand.vmem [shape: f32[1,128], index: 6, kind: input, shape index: {}]   ;;  %s1186_s7 = inlined_call_operand.hbm [shape: bf16[128,128], index: 7, kind: input, shape index: {}]   ;;  %s1187_s8 = inlined_call_operand.vmem [shape: f32[1,128], index: 8, kind: input, shape index: {}]   ;;  %s1188_s9 = inlined_call_operand.hbm [shape: bf16[16,128], index: 9, kind: output, shape index: {}]  }
   0x1   :  { %15 = vsyncpa [#allocation6], 0 }
   0x2   :  { %16 = vsyncpa [#allocation9], 0 }
   0x3   :  { %17 = vsyncpa [#allocation4], 0  ;;  %s963_s30 = smov [#allocation5]   ;;  %s964_s11 = smov [#allocation8]  }
   0x4   :  { %s35_s10 = sshll.u32 %s963_s30, 4  ;;  %s63_s12 = sshll.u32 %s964_s11, 4  ;;  %s36_s10 = int_to_ptr.vmem [resolvable:$true] %s35_s10  ;;  %s1023_s12 = int_to_ptr.vmem [resolvable:$true] %s63_s12 }
   0x5   :  { %s823_s15 = scalar_lea.hbm %s1180_s1, 1024 }
   0x6   :  { %p824_p0 = scmp.ne.s32.totalorder %s1180_s1, %s823_s15  ;;  %p827_p1 = scmp.lt.u32.totalorder %s823_s15, %s1180_s1 }
   0x8   :  { %p829_p2 = pnand %p827_p1, %p824_p0 }
   0xa   :  { %832 = shalt.err (!%p829_p2)
}
   0xb   :  { %s833_s20 = scalar_lea.vmem %s36_s10, 1024  ;;  %p838_p4 = scmp.lt.s32.totalorder %s36_s10, %s36_s10 }
   0xc   :  { %p834_p3 = scmp.ne.s32.totalorder %s36_s10, %s833_s20  ;;  %p839_p5 = scmp.lt.s32.totalorder %s833_s20, %s833_s20 }
   0xe   :  { %p840_p6 = por %p839_p5, %p838_p4 }
  0x10   :  { %p841_p7 = pnand %p840_p6, %p834_p3 }
  0x12   :  { %844 = shalt.err (!%p841_p7)
}
  0x13   :  { %s965_s21 = smov 64   ;;  %s966_s22 = smov 4  }
  0x14   :  { %41 = dma.hbm_to_vmem [thread:$0]  %s1180_s1, 1024, %s36_s10, [#allocation6], %s965_s21, %s965_s21, %s966_s22  }
  0x15   :  { %s845_s27 = scalar_lea.hbm %s1184_s5, 1024 }
  0x16   :  { %p846_p8 = scmp.ne.s32.totalorder %s1184_s5, %s845_s27  ;;  %p849_p9 = scmp.lt.u32.totalorder %s845_s27, %s1184_s5 }
  0x18   :  { %p851_p10 = pnand %p849_p9, %p846_p8 }
  0x1a   :  { %854 = shalt.err (!%p851_p10)
}
  0x1b   :  { %s855_s13 = scalar_lea.vmem %s1023_s12, 1024  ;;  %p860_p12 = scmp.lt.s32.totalorder %s1023_s12, %s1023_s12 }
  0x1c   :  { %p856_p11 = scmp.ne.s32.totalorder %s1023_s12, %s855_s13  ;;  %p861_p13 = scmp.lt.s32.totalorder %s855_s13, %s855_s13 }
  0x1e   :  { %p862_p0 = por %p861_p13, %p860_p12 }
  0x20   :  { %p863_p1 = pnand %p862_p0, %p856_p11 }
  0x22   :  { %866 = shalt.err (!%p863_p1)
}
  0x23   :  { %69 = dma.hbm_to_vmem [thread:$0]  %s1184_s5, 1024, %s1023_s12, [#allocation9], %s965_s21, %s965_s21, %s966_s22  }
  0x24   :  { %s967_s14 = smov [#allocation2]   ;;  %s968_s16 = smov [#allocation7]  }
  0x25   :  { %s23_s15 = sshll.u32 %s967_s14, 4  ;;  %s49_s17 = sshll.u32 %s968_s16, 4  ;;  %s24_s15 = int_to_ptr.vmem [resolvable:$true] %s23_s15  ;;  %s1060_s17 = int_to_ptr.vmem [resolvable:$true] %s49_s17 }
  0x26   :  { %s867_s20 = scalar_lea.hbm %s1179_s0, 128 }
  0x27   :  { %p868_p2 = scmp.ne.s32.totalorder %s1179_s0, %s867_s20  ;;  %p871_p3 = scmp.lt.u32.totalorder %s867_s20, %s1179_s0 }
  0x29   :  { %p873_p4 = pnand %p871_p3, %p868_p2 }
  0x2b   :  { %876 = shalt.err (!%p873_p4)
}
  0x2c   :  { %s877_s5 = scalar_lea.vmem %s24_s15, 128  ;;  %p882_p6 = scmp.lt.s32.totalorder %s24_s15, %s24_s15 }
  0x2d   :  { %p878_p5 = scmp.ne.s32.totalorder %s24_s15, %s877_s5  ;;  %p883_p7 = scmp.lt.s32.totalorder %s877_s5, %s877_s5 }
  0x2f   :  { %p884_p8 = por %p883_p7, %p882_p6 }
  0x31   :  { %p885_p9 = pnand %p884_p8, %p878_p5 }
  0x33   :  { %888 = shalt.err (!%p885_p9)
}
  0x34   :  { %29 = dma.hbm_to_vmem [thread:$0]  %s1179_s0, 128, %s24_s15, [#allocation3], %s965_s21, %s965_s21, %s966_s22  }
  0x35   :  { %s889_s30 = scalar_lea.hbm %s1182_s3, 1024 }
  0x36   :  { %p890_p10 = scmp.ne.s32.totalorder %s1182_s3, %s889_s30  ;;  %p893_p11 = scmp.lt.u32.totalorder %s889_s30, %s1182_s3 }
  0x38   :  { %p895_p12 = pnand %p893_p11, %p890_p10 }
  0x3a   :  { %898 = shalt.err (!%p895_p12)
}
  0x3b   :  { %s899_s14 = scalar_lea.vmem %s1060_s17, 1024  ;;  %p904_p0 = scmp.lt.s32.totalorder %s1060_s17, %s1060_s17 }
  0x3c   :  { %p900_p13 = scmp.ne.s32.totalorder %s1060_s17, %s899_s14  ;;  %p905_p1 = scmp.lt.s32.totalorder %s899_s14, %s899_s14 }
  0x3e   :  { %p906_p2 = por %p905_p1, %p904_p0 }
  0x40   :  { %p907_p3 = pnand %p906_p2, %p900_p13 }
  0x42   :  { %910 = shalt.err (!%p907_p3)
}
  0x43   :  { %55 = dma.hbm_to_vmem [thread:$0]  %s1182_s3, 1024, %s1060_s17, [#allocation6], %s965_s21, %s965_s21, %s966_s22  }
  0x44   :  { %s969_s16 = smov [#allocation10]   ;;  %s911_s23 = scalar_lea.hbm %s1186_s7, 1024 }
  0x45   :  { %s77_s18 = sshll.u32 %s969_s16, 4  ;;  %p912_p4 = scmp.ne.s32.totalorder %s1186_s7, %s911_s23  ;;  %s78_s18 = int_to_ptr.vmem [resolvable:$true] %s77_s18 }
  0x46   :  { %p915_p5 = scmp.lt.u32.totalorder %s911_s23, %s1186_s7 }
  0x48   :  { %p917_p6 = pnand %p915_p5, %p912_p4 }
  0x4a   :  { %920 = shalt.err (!%p917_p6)
}
  0x4b   :  { %s921_s12 = scalar_lea.vmem %s78_s18, 1024  ;;  %p926_p8 = scmp.lt.s32.totalorder %s78_s18, %s78_s18 }
  0x4c   :  { %p922_p7 = scmp.ne.s32.totalorder %s78_s18, %s921_s12  ;;  %p927_p9 = scmp.lt.s32.totalorder %s921_s12, %s921_s12 }
  0x4e   :  { %p928_p10 = por %p927_p9, %p926_p8 }
  0x50   :  { %p929_p11 = pnand %p928_p10, %p922_p7 }
  0x52   :  { %932 = shalt.err (!%p929_p11)
}
  0x53   :  { %83 = dma.hbm_to_vmem [thread:$0]  %s1186_s7, 1024, %s78_s18, [#allocation9], %s965_s21, %s965_s21, %s966_s22  }
  0x54   :  { %955 = dma.done.wait [#allocation3], 128  }
  0x55   :  { %956 = vsyncadd [#allocation3], 4294967168 }
  0x56   :  { %957 = dma.done.wait [#allocation6], 2048  }
  0x57   :  { %958 = vsyncadd [#allocation6], 4294965248 }
  0x58   :  { %959 = dma.done.wait [#allocation9], 2048  }
  0x59   :  { %960 = vsyncadd [#allocation9], 4294965248  ;;  %v970_v0 = vmov 0.0   ;;  %vm971_vm0 = vmmov 0   ;;  %v782_v1 = vld [vmem:[#allocation5] sm:$0xff]   ;;  %v783_v2 = vld [vmem:[#allocation5 + $0x8] sm:$0xff]  }
  0x5a   :  { %692 = vmatprep.subr.bf16.mxu0 %v970_v0  ;;  %708 = vmatprep.mubr.msk.bf16.mxu0 %vm971_vm0, %v970_v0  ;;  %v784_v3 = vld [vmem:[#allocation5 + $0x10] sm:$0xff]   ;;  %v791_v4 = vld [vmem:[#allocation7] sm:$0xff]   ;;  %v785_v5 = vld [vmem:[#allocation5 + $0x18] sm:$0xff]  }
  0x5b   :  { %712 = vmatprep.subr.bf16.mxu1 %v970_v0  ;;  %728 = vmatprep.mubr.msk.bf16.mxu1 %vm971_vm0, %v970_v0  ;;  %v792_v6 = vld [vmem:[#allocation7 + $0x8] sm:$0xff]   ;;  %v786_v7 = vld [vmem:[#allocation5 + $0x20] sm:$0xff]   ;;  %v793_v8 = vld [vmem:[#allocation7 + $0x10] sm:$0xff]  }
  0x5c   :  { %693 = vmatpush3.bf16.msra.mxu0 %v782_v1  ;;  %713 = vmatpush3.bf16.msra.mxu1 %v791_v4  ;;  %v787_v9 = vld [vmem:[#allocation5 + $0x28] sm:$0xff]   ;;  %v794_v10 = vld [vmem:[#allocation7 + $0x18] sm:$0xff]   ;;  %v788_v11 = vld [vmem:[#allocation5 + $0x30] sm:$0xff]  }
  0x5d   :  { %694 = vmatprep.subr.bf16.mxu0 %v970_v0  ;;  %714 = vmatprep.subr.bf16.mxu1 %v970_v0  ;;  %v795_v12 = vld [vmem:[#allocation7 + $0x20] sm:$0xff]   ;;  %v789_v13 = vld [vmem:[#allocation5 + $0x38] sm:$0xff]   ;;  %v796_v14 = vld [vmem:[#allocation7 + $0x28] sm:$0xff]  }
  0x5e   :  { %v790_v15 = vld [vmem:[#allocation2] sm:$0xff]   ;;  %v797_v16 = vld [vmem:[#allocation7 + $0x30] sm:$0xff]   ;;  %v799_v18 = vld [vmem:[#allocation8] sm:$0xff]  }
  0x5f   :  { %v798_v17 = vld [vmem:[#allocation7 + $0x38] sm:$0xff]   ;;  %v800_v19 = vld [vmem:[#allocation8 + $0x8] sm:$0xff]   ;;  %v801_v20 = vld [vmem:[#allocation8 + $0x10] sm:$0xff]  }
  0x60   :  { %695 = vmatpush3.bf16.msra.mxu0 %v783_v2  ;;  %715 = vmatpush3.bf16.msra.mxu1 %v792_v6  ;;  %v802_v21 = vld [vmem:[#allocation8 + $0x18] sm:$0xff]   ;;  %v803_v22 = vld [vmem:[#allocation8 + $0x20] sm:$0xff]   ;;  %v804_v23 = vld [vmem:[#allocation8 + $0x28] sm:$0xff]  }
  0x61   :  { %696 = vmatprep.subr.bf16.mxu0 %v970_v0  ;;  %716 = vmatprep.subr.bf16.mxu1 %v970_v0  ;;  %v608_v24 = vld [vmem:[%s1181_s2] ss:$0 sm:$0xff]  ;;  %v805_v34 = vld [vmem:[#allocation8 + $0x30] sm:$0xff]   ;;  %v807_v36 = vld [vmem:[#allocation10] sm:$0xff]  }
  0x62   :  { %v806_v35 = vld [vmem:[#allocation8 + $0x38] sm:$0xff]   ;;  %v808_v37 = vld [vmem:[#allocation10 + $0x8] sm:$0xff]   ;;  %v809_v38 = vld [vmem:[#allocation10 + $0x10] sm:$0xff]  }
  0x63   :  { %v810_v39 = vld [vmem:[#allocation10 + $0x18] sm:$0xff]   ;;  %v811_v40 = vld [vmem:[#allocation10 + $0x20] sm:$0xff]   ;;  %v812_v41 = vld [vmem:[#allocation10 + $0x28] sm:$0xff]  }
  0x64   :  { %697 = vmatpush3.bf16.msra.mxu0 %v784_v3  ;;  %717 = vmatpush3.bf16.msra.mxu1 %v793_v8  ;;  %v618_v42 = vld [vmem:[%s1183_s4] ss:$0 sm:$0xff]  ;;  %v813_v52 = vld [vmem:[#allocation10 + $0x30] sm:$0xff]  }
  0x65   :  { %698 = vmatprep.subr.bf16.mxu0 %v970_v0  ;;  %718 = vmatprep.subr.bf16.mxu1 %v970_v0  ;;  %v814_v53 = vld [vmem:[#allocation10 + $0x38] sm:$0xff]  }
  0x66   :  { %v627_v54 = vld [vmem:[%s1185_s6] ss:$0 sm:$0xff]  ;;  %s972_s6 = smov [#allocation11]  }
  0x67   :  { %s594_s13 = sshll.u32 %s972_s6, 4  ;;  %s595_s13 = int_to_ptr.vmem [resolvable:$true] %s594_s13 }
  0x68   :  { %699 = vmatpush3.bf16.msra.mxu0 %v785_v5  ;;  %719 = vmatpush3.bf16.msra.mxu1 %v794_v10  ;;  %p938_p13 = scmp.lt.s32.totalorder %s595_s13, %s595_s13 }
  0x69   :  { %700 = vmatprep.subr.bf16.mxu0 %v970_v0  ;;  %720 = vmatprep.subr.bf16.mxu1 %v970_v0 }
  0x6c   :  { %701 = vmatpush3.bf16.msra.mxu0 %v786_v7  ;;  %721 = vmatpush3.bf16.msra.mxu1 %v795_v12 }
  0x6d   :  { %702 = vmatprep.subr.bf16.mxu0 %v970_v0  ;;  %722 = vmatprep.subr.bf16.mxu1 %v970_v0 }
  0x70   :  { %703 = vmatpush3.bf16.msra.mxu0 %v787_v9  ;;  %723 = vmatpush3.bf16.msra.mxu1 %v796_v14 }
  0x71   :  { %704 = vmatprep.subr.bf16.mxu0 %v970_v0  ;;  %724 = vmatprep.subr.bf16.mxu1 %v970_v0 }
  0x74   :  { %705 = vmatpush3.bf16.msra.mxu0 %v788_v11  ;;  %725 = vmatpush3.bf16.msra.mxu1 %v797_v16 }
  0x75   :  { %706 = vmatprep.subr.bf16.mxu0 %v970_v0  ;;  %726 = vmatprep.subr.bf16.mxu1 %v970_v0 }
  0x78   :  { %707 = vmatpush3.bf16.msra.mxu0 %v789_v13  ;;  %727 = vmatpush3.bf16.msra.mxu1 %v798_v17 }
  0x79   :  { %732 = vmatprep.subr.bf16.mxu0 %v970_v0  ;;  %752 = vmatprep.subr.bf16.mxu1 %v970_v0 }
  0x7b   :  { %709 = vmatmul.mubr.bf16.vlgmr.msra.gmra.mrb[0].mxu0 %v790_v15 }
  0x7c   :  { %748 = vmatprep.mubr.msk.bf16.mxu0 %vm971_vm0, %v970_v0  ;;  %733 = vmatpush3.bf16.msra.mxu0 %v799_v18 }
  0x7d   :  { %734 = vmatprep.subr.bf16.mxu0 %v970_v0 }
  0x80   :  { %735 = vmatpush3.bf16.msra.mxu0 %v800_v19 }
  0x81   :  { %736 = vmatprep.subr.bf16.mxu0 %v970_v0 }
  0x84   :  { %737 = vmatpush3.bf16.msra.mxu0 %v801_v20 }
  0x85   :  { %738 = vmatprep.subr.bf16.mxu0 %v970_v0 }
  0x88   :  { %739 = vmatpush3.bf16.msra.mxu0 %v802_v21 }
  0x89   :  { %740 = vmatprep.subr.bf16.mxu0 %v970_v0 }
  0x8c   :  { %741 = vmatpush3.bf16.msra.mxu0 %v803_v22 }
  0x8d   :  { %742 = vmatprep.subr.bf16.mxu0 %v970_v0 }
  0x90   :  { %743 = vmatpush3.bf16.msra.mxu0 %v804_v23 }
  0x91   :  { %744 = vmatprep.subr.bf16.mxu0 %v970_v0 }
  0x94   :  { %745 = vmatpush3.bf16.msra.mxu0 %v805_v34 }
  0x95   :  { %746 = vmatprep.subr.bf16.mxu0 %v970_v0 }
  0x98   :  { %747 = vmatpush3.bf16.msra.mxu0 %v806_v35 }
 0x14e   :  { %v215_v25 = vpop.f32.mrb[0].mxu0 }
 0x14f   :  { %v216_v26 = vadd.f32 %v608_v24, %v215_v25  ;;  %v710_v27 = vpop.f32.mrb[1].mxu0 }
 0x150   :  { %v218_v28 = vpop.f32.mrb[2].mxu0 }
 0x151   :  { %v219_v29 = vadd.f32 %v608_v24, %v218_v28  ;;  %v711_v30 = vpop.f32.mrb[3].mxu0  ;;  %v222_v31 = vmax.f32 %v216_v26, 0.0 }
 0x153   :  { %v223_v32 = vmax.f32 %v219_v29, 0.0 }
 0x155   :  { %v224_v33 = vpack.c.bf16 %v223_v32, %v222_v31 }
 0x157   :  { %729 = vmatmul.mubr.bf16.vlgmr.msra.gmra.mrb[0].mxu1 %v224_v33 }
 0x158   :  { %768 = vmatprep.mubr.msk.bf16.mxu1 %vm971_vm0, %v970_v0  ;;  %753 = vmatpush3.bf16.msra.mxu1 %v807_v36 }
 0x159   :  { %754 = vmatprep.subr.bf16.mxu1 %v970_v0 }
 0x15c   :  { %755 = vmatpush3.bf16.msra.mxu1 %v808_v37 }
 0x15d   :  { %756 = vmatprep.subr.bf16.mxu1 %v970_v0 }
 0x160   :  { %757 = vmatpush3.bf16.msra.mxu1 %v809_v38 }
 0x161   :  { %758 = vmatprep.subr.bf16.mxu1 %v970_v0 }
 0x164   :  { %759 = vmatpush3.bf16.msra.mxu1 %v810_v39 }
 0x165   :  { %760 = vmatprep.subr.bf16.mxu1 %v970_v0 }
 0x168   :  { %761 = vmatpush3.bf16.msra.mxu1 %v811_v40 }
 0x169   :  { %762 = vmatprep.subr.bf16.mxu1 %v970_v0 }
 0x16c   :  { %763 = vmatpush3.bf16.msra.mxu1 %v812_v41 }
 0x16d   :  { %764 = vmatprep.subr.bf16.mxu1 %v970_v0 }
 0x170   :  { %765 = vmatpush3.bf16.msra.mxu1 %v813_v52 }
 0x171   :  { %766 = vmatprep.subr.bf16.mxu1 %v970_v0  ;;  %v636_v0 = vld [vmem:[%s1187_s8] ss:$0 sm:$0xff]  ;;  %s933_s8 = scalar_lea.vmem %s595_s13, 128 }
 0x172   :  { %p934_p12 = scmp.ne.s32.totalorder %s595_s13, %s933_s8  ;;  %p939_p0 = scmp.lt.s32.totalorder %s933_s8, %s933_s8 }
 0x174   :  { %767 = vmatpush3.bf16.msra.mxu1 %v814_v53  ;;  %p940_p1 = por %p939_p0, %p938_p13 }
 0x176   :  { %p941_p2 = pnand %p940_p1, %p934_p12 }
 0x22a   :  { %v330_v43 = vpop.f32.mrb[0].mxu1 }
 0x22b   :  { %v331_v44 = vadd.f32 %v618_v42, %v330_v43  ;;  %v730_v45 = vpop.f32.mrb[1].mxu1 }
 0x22c   :  { %v333_v46 = vpop.f32.mrb[2].mxu1 }
 0x22d   :  { %v334_v47 = vadd.f32 %v618_v42, %v333_v46  ;;  %v731_v48 = vpop.f32.mrb[3].mxu1  ;;  %v337_v49 = vmax.f32 %v331_v44, 0.0 }
 0x22f   :  { %v338_v50 = vmax.f32 %v334_v47, 0.0 }
 0x231   :  { %v339_v51 = vpack.c.bf16 %v338_v50, %v337_v49 }
 0x233   :  { %749 = vmatmul.mubr.bf16.vlgmr.msra.gmra.mrb[4].mxu0 %v339_v51 }
 0x306   :  { %v445_v55 = vpop.f32.mrb[4].mxu0 }
 0x307   :  { %v446_v56 = vadd.f32 %v627_v54, %v445_v55  ;;  %v750_v57 = vpop.f32.mrb[5].mxu0 }
 0x308   :  { %v448_v58 = vpop.f32.mrb[6].mxu0 }
 0x309   :  { %v449_v59 = vadd.f32 %v627_v54, %v448_v58  ;;  %v751_v60 = vpop.f32.mrb[7].mxu0  ;;  %v452_v61 = vmax.f32 %v446_v56, 0.0 }
 0x30b   :  { %v453_v62 = vmax.f32 %v449_v59, 0.0 }
 0x30d   :  { %v454_v63 = vpack.c.bf16 %v453_v62, %v452_v61 }
 0x30f   :  { %769 = vmatmul.mubr.bf16.vlgmr.msra.gmra.mrb[4].mxu1 %v454_v63 }
 0x3e2   :  { %v560_v1 = vpop.f32.mrb[4].mxu1 }
 0x3e3   :  { %v561_v2 = vadd.f32 %v636_v0, %v560_v1  ;;  %v770_v3 = vpop.f32.mrb[5].mxu1 }
 0x3e4   :  { %v563_v4 = vpop.f32.mrb[6].mxu1 }
 0x3e5   :  { %v645_v5 = vmul.f32 -1.442695, %v561_v2  ;;  %v564_v6 = vadd.f32 %v636_v0, %v563_v4  ;;  %v771_v7 = vpop.f32.mrb[7].mxu1 }
 0x3e7   :  { %815 = vpow2.f32 %v645_v5  ;;  %v646_v8 = vmul.f32 -1.442695, %v564_v6 }
 0x3e9   :  { %817 = vpow2.f32 %v646_v8 }
 0x3f1   :  { %v816_v9 = vpop.eup %815 }
 0x3f2   :  { %v573_v10 = vadd.f32 1.0, %v816_v9 }
 0x3f3   :  { %v818_v11 = vpop.eup %817 }
 0x3f4   :  { %v574_v12 = vadd.f32 1.0, %v818_v11  ;;  %819 = vrcp.f32 %v573_v10 }
 0x3f6   :  { %821 = vrcp.f32 %v574_v12 }
 0x3fe   :  { %v820_v13 = vpop.eup %819 }
 0x400   :  { %v822_v14 = vpop.eup %821 }
 0x401   :  { %v654_v15 = vpack.c.bf16 %v822_v14, %v820_v13 }
 0x403   :  { %655 = vst [vmem:[#allocation11] sm:$0xff] %v654_v15  }
 0x404   :  { %944 = shalt.err (!%p941_p2)
}
 0x405   :  { %s945_s14 = scalar_lea.hbm %s1188_s9, 128 }
 0x406   :  { %p946_p3 = scmp.ne.s32.totalorder %s1188_s9, %s945_s14  ;;  %p949_p4 = scmp.lt.u32.totalorder %s945_s14, %s1188_s9 }
 0x408   :  { %p951_p5 = pnand %p949_p4, %p946_p3 }
 0x40a   :  { %954 = shalt.err (!%p951_p5)
}
 0x40b   :  { %600 = dma.vmem_to_hbm [thread:$0]  %s595_s13, 128, %s1188_s9, [#allocation4], %s965_s21, %s965_s21, %s966_s22  }
 0x40c   :  { %961 = dma.done.wait [#allocation4], 128  }
 0x40d   :  { %962 = vsyncadd [#allocation4], 4294967168 }
 0x40e   :  { %604 = vsyncpa [#allocation3], 1 }
 0x40f   :  { %605 = vsyncpa [#allocation6], 1 }
 0x410   :  { %606 = vsyncpa [#allocation9], 1 }
 0x411   :  { %607 = vsyncpa [#allocation4], 1 }

// kernel: tpu_custom_call.1
= control target key start
LH: loop header
LB: loop body
LE: loop exit
PB: predicated region body
PF: predicated region fallthrough
CT: control target
= control target key end

     0   :  { %14 = vsyncpa [#allocation3], 0  ;;  %s1179_s0 = inlined_call_operand.hbm [shape: bf16[16,128], index: 0, kind: input, shape index: {}]   ;;  %s1180_s1 = inlined_call_operand.hbm [shape: bf16[128,128], index: 1, kind: input, shape index: {}]   ;;  %s1181_s2 = inlined_call_operand.vmem [shape: f32[1,128], index: 2, kind: input, shape index: {}]   ;;  %s1182_s3 = inlined_call_operand.hbm [shape: bf16[128,128], index: 3, kind: input, shape index: {}]   ;;  %s1183_s4 = inlined_call_operand.vmem [shape: f32[1,128], index: 4, kind: input, shape index: {}]   ;;  %s1184_s5 = inlined_call_operand.hbm [shape: bf16[128,128], index: 5, kind: input, shape index: {}]   ;;  %s1185_s6 = inlined_call_operand.vmem [shape: f32[1,128], index: 6, kind: input, shape index: {}]   ;;  %s1186_s7 = inlined_call_operand.hbm [shape: bf16[128,128], index: 7, kind: input, shape index: {}]   ;;  %s1187_s8 = inlined_call_operand.vmem [shape: f32[1,128], index: 8, kind: input, shape index: {}]   ;;  %s1188_s9 = inlined_call_operand.hbm [shape: bf16[16,128], index: 9, kind: output, shape index: {}]  }
   0x1   :  { %15 = vsyncpa [#allocation6], 0 }
   0x2   :  { %16 = vsyncpa [#allocation9], 0 }
   0x3   :  { %17 = vsyncpa [#allocation4], 0  ;;  %s963_s30 = smov [#allocation5]   ;;  %s964_s11 = smov [#allocation8]  }
   0x4   :  { %s35_s10 = sshll.u32 %s963_s30, 4  ;;  %s63_s12 = sshll.u32 %s964_s11, 4  ;;  %s36_s10 = int_to_ptr.vmem [resolvable:$true] %s35_s10  ;;  %s1023_s12 = int_to_ptr.vmem [resolvable:$true] %s63_s12 }
   0x5   :  { %s823_s15 = scalar_lea.hbm %s1180_s1, 1024 }
   0x6   :  { %p824_p0 = scmp.ne.s32.totalorder %s1180_s1, %s823_s15  ;;  %p827_p1 = scmp.lt.u32.totalorder %s823_s15, %s1180_s1 }
   0x8   :  { %p829_p2 = pnand %p827_p1, %p824_p0 }
   0xa   :  { %832 = shalt.err (!%p829_p2)
}
   0xb   :  { %s833_s20 = scalar_lea.vmem %s36_s10, 1024  ;;  %p838_p4 = scmp.lt.s32.totalorder %s36_s10, %s36_s10 }
   0xc   :  { %p834_p3 = scmp.ne.s32.totalorder %s36_s10, %s833_s20  ;;  %p839_p5 = scmp.lt.s32.totalorder %s833_s20, %s833_s20 }
   0xe   :  { %p840_p6 = por %p839_p5, %p838_p4 }
  0x10   :  { %p841_p7 = pnand %p840_p6, %p834_p3 }
  0x12   :  { %844 = shalt.err (!%p841_p7)
}
  0x13   :  { %s965_s21 = smov 64   ;;  %s966_s22 = smov 4  }
  0x14   :  { %41 = dma.hbm_to_vmem [thread:$0]  %s1180_s1, 1024, %s36_s10, [#allocation6], %s965_s21, %s965_s21, %s966_s22  }
  0x15   :  { %s845_s27 = scalar_lea.hbm %s1184_s5, 1024 }
  0x16   :  { %p846_p8 = scmp.ne.s32.totalorder %s1184_s5, %s845_s27  ;;  %p849_p9 = scmp.lt.u32.totalorder %s845_s27, %s1184_s5 }
  0x18   :  { %p851_p10 = pnand %p849_p9, %p846_p8 }
  0x1a   :  { %854 = shalt.err (!%p851_p10)
}
  0x1b   :  { %s855_s13 = scalar_lea.vmem %s1023_s12, 1024  ;;  %p860_p12 = scmp.lt.s32.totalorder %s1023_s12, %s1023_s12 }
  0x1c   :  { %p856_p11 = scmp.ne.s32.totalorder %s1023_s12, %s855_s13  ;;  %p861_p13 = scmp.lt.s32.totalorder %s855_s13, %s855_s13 }
  0x1e   :  { %p862_p0 = por %p861_p13, %p860_p12 }
  0x20   :  { %p863_p1 = pnand %p862_p0, %p856_p11 }
  0x22   :  { %866 = shalt.err (!%p863_p1)
}
  0x23   :  { %69 = dma.hbm_to_vmem [thread:$0]  %s1184_s5, 1024, %s1023_s12, [#allocation9], %s965_s21, %s965_s21, %s966_s22  }
  0x24   :  { %s967_s14 = smov [#allocation2]   ;;  %s968_s16 = smov [#allocation7]  }
  0x25   :  { %s23_s15 = sshll.u32 %s967_s14, 4  ;;  %s49_s17 = sshll.u32 %s968_s16, 4  ;;  %s24_s15 = int_to_ptr.vmem [resolvable:$true] %s23_s15  ;;  %s1060_s17 = int_to_ptr.vmem [resolvable:$true] %s49_s17 }
  0x26   :  { %s867_s20 = scalar_lea.hbm %s1179_s0, 128 }
  0x27   :  { %p868_p2 = scmp.ne.s32.totalorder %s1179_s0, %s867_s20  ;;  %p871_p3 = scmp.lt.u32.totalorder %s867_s20, %s1179_s0 }
  0x29   :  { %p873_p4 = pnand %p871_p3, %p868_p2 }
  0x2b   :  { %876 = shalt.err (!%p873_p4)
}
  0x2c   :  { %s877_s5 = scalar_lea.vmem %s24_s15, 128  ;;  %p882_p6 = scmp.lt.s32.totalorder %s24_s15, %s24_s15 }
  0x2d   :  { %p878_p5 = scmp.ne.s32.totalorder %s24_s15, %s877_s5  ;;  %p883_p7 = scmp.lt.s32.totalorder %s877_s5, %s877_s5 }
  0x2f   :  { %p884_p8 = por %p883_p7, %p882_p6 }
  0x31   :  { %p885_p9 = pnand %p884_p8, %p878_p5 }
  0x33   :  { %888 = shalt.err (!%p885_p9)
}
  0x34   :  { %29 = dma.hbm_to_vmem [thread:$0]  %s1179_s0, 128, %s24_s15, [#allocation3], %s965_s21, %s965_s21, %s966_s22  }
  0x35   :  { %s889_s30 = scalar_lea.hbm %s1182_s3, 1024 }
  0x36   :  { %p890_p10 = scmp.ne.s32.totalorder %s1182_s3, %s889_s30  ;;  %p893_p11 = scmp.lt.u32.totalorder %s889_s30, %s1182_s3 }
  0x38   :  { %p895_p12 = pnand %p893_p11, %p890_p10 }
  0x3a   :  { %898 = shalt.err (!%p895_p12)
}
  0x3b   :  { %s899_s14 = scalar_lea.vmem %s1060_s17, 1024  ;;  %p904_p0 = scmp.lt.s32.totalorder %s1060_s17, %s1060_s17 }
  0x3c   :  { %p900_p13 = scmp.ne.s32.totalorder %s1060_s17, %s899_s14  ;;  %p905_p1 = scmp.lt.s32.totalorder %s899_s14, %s899_s14 }
  0x3e   :  { %p906_p2 = por %p905_p1, %p904_p0 }
  0x40   :  { %p907_p3 = pnand %p906_p2, %p900_p13 }
  0x42   :  { %910 = shalt.err (!%p907_p3)
}
  0x43   :  { %55 = dma.hbm_to_vmem [thread:$0]  %s1182_s3, 1024, %s1060_s17, [#allocation6], %s965_s21, %s965_s21, %s966_s22  }
  0x44   :  { %s969_s16 = smov [#allocation10]   ;;  %s911_s23 = scalar_lea.hbm %s1186_s7, 1024 }
  0x45   :  { %s77_s18 = sshll.u32 %s969_s16, 4  ;;  %p912_p4 = scmp.ne.s32.totalorder %s1186_s7, %s911_s23  ;;  %s78_s18 = int_to_ptr.vmem [resolvable:$true] %s77_s18 }
  0x46   :  { %p915_p5 = scmp.lt.u32.totalorder %s911_s23, %s1186_s7 }
  0x48   :  { %p917_p6 = pnand %p915_p5, %p912_p4 }
  0x4a   :  { %920 = shalt.err (!%p917_p6)
}
  0x4b   :  { %s921_s12 = scalar_lea.vmem %s78_s18, 1024  ;;  %p926_p8 = scmp.lt.s32.totalorder %s78_s18, %s78_s18 }
  0x4c   :  { %p922_p7 = scmp.ne.s32.totalorder %s78_s18, %s921_s12  ;;  %p927_p9 = scmp.lt.s32.totalorder %s921_s12, %s921_s12 }
  0x4e   :  { %p928_p10 = por %p927_p9, %p926_p8 }
  0x50   :  { %p929_p11 = pnand %p928_p10, %p922_p7 }
  0x52   :  { %932 = shalt.err (!%p929_p11)
}
  0x53   :  { %83 = dma.hbm_to_vmem [thread:$0]  %s1186_s7, 1024, %s78_s18, [#allocation9], %s965_s21, %s965_s21, %s966_s22  }
  0x54   :  { %955 = dma.done.wait [#allocation3], 128  }
  0x55   :  { %956 = vsyncadd [#allocation3], 4294967168 }
  0x56   :  { %957 = dma.done.wait [#allocation6], 2048  }
  0x57   :  { %958 = vsyncadd [#allocation6], 4294965248 }
  0x58   :  { %959 = dma.done.wait [#allocation9], 2048  }
  0x59   :  { %960 = vsyncadd [#allocation9], 4294965248  ;;  %v970_v0 = vmov 0.0   ;;  %vm971_vm0 = vmmov 0   ;;  %v782_v1 = vld [vmem:[#allocation5] sm:$0xff]   ;;  %v783_v2 = vld [vmem:[#allocation5 + $0x8] sm:$0xff]  }
  0x5a   :  { %692 = vmatprep.subr.bf16.mxu0 %v970_v0  ;;  %708 = vmatprep.mubr.msk.bf16.mxu0 %vm971_vm0, %v970_v0  ;;  %v784_v3 = vld [vmem:[#allocation5 + $0x10] sm:$0xff]   ;;  %v791_v4 = vld [vmem:[#allocation7] sm:$0xff]   ;;  %v785_v5 = vld [vmem:[#allocation5 + $0x18] sm:$0xff]  }
  0x5b   :  { %712 = vmatprep.subr.bf16.mxu1 %v970_v0  ;;  %728 = vmatprep.mubr.msk.bf16.mxu1 %vm971_vm0, %v970_v0  ;;  %v792_v6 = vld [vmem:[#allocation7 + $0x8] sm:$0xff]   ;;  %v786_v7 = vld [vmem:[#allocation5 + $0x20] sm:$0xff]   ;;  %v793_v8 = vld [vmem:[#allocation7 + $0x10] sm:$0xff]  }
  0x5c   :  { %693 = vmatpush3.bf16.msra.mxu0 %v782_v1  ;;  %713 = vmatpush3.bf16.msra.mxu1 %v791_v4  ;;  %v787_v9 = vld [vmem:[#allocation5 + $0x28] sm:$0xff]   ;;  %v794_v10 = vld [vmem:[#allocation7 + $0x18] sm:$0xff]   ;;  %v788_v11 = vld [vmem:[#allocation5 + $0x30] sm:$0xff]  }
  0x5d   :  { %694 = vmatprep.subr.bf16.mxu0 %v970_v0  ;;  %714 = vmatprep.subr.bf16.mxu1 %v970_v0  ;;  %v795_v12 = vld [vmem:[#allocation7 + $0x20] sm:$0xff]   ;;  %v789_v13 = vld [vmem:[#allocation5 + $0x38] sm:$0xff]   ;;  %v796_v14 = vld [vmem:[#allocation7 + $0x28] sm:$0xff]  }
  0x5e   :  { %v790_v15 = vld [vmem:[#allocation2] sm:$0xff]   ;;  %v797_v16 = vld [vmem:[#allocation7 + $0x30] sm:$0xff]   ;;  %v799_v18 = vld [vmem:[#allocation8] sm:$0xff]  }
  0x5f   :  { %v798_v17 = vld [vmem:[#allocation7 + $0x38] sm:$0xff]   ;;  %v800_v19 = vld [vmem:[#allocation8 + $0x8] sm:$0xff]   ;;  %v801_v20 = vld [vmem:[#allocation8 + $0x10] sm:$0xff]  }
  0x60   :  { %695 = vmatpush3.bf16.msra.mxu0 %v783_v2  ;;  %715 = vmatpush3.bf16.msra.mxu1 %v792_v6  ;;  %v802_v21 = vld [vmem:[#allocation8 + $0x18] sm:$0xff]   ;;  %v803_v22 = vld [vmem:[#allocation8 + $0x20] sm:$0xff]   ;;  %v804_v23 = vld [vmem:[#allocation8 + $0x28] sm:$0xff]  }
  0x61   :  { %696 = vmatprep.subr.bf16.mxu0 %v970_v0  ;;  %716 = vmatprep.subr.bf16.mxu1 %v970_v0  ;;  %v608_v24 = vld [vmem:[%s1181_s2] ss:$0 sm:$0xff]  ;;  %v805_v34 = vld [vmem:[#allocation8 + $0x30] sm:$0xff]   ;;  %v807_v36 = vld [vmem:[#allocation10] sm:$0xff]  }
  0x62   :  { %v806_v35 = vld [vmem:[#allocation8 + $0x38] sm:$0xff]   ;;  %v808_v37 = vld [vmem:[#allocation10 + $0x8] sm:$0xff]   ;;  %v809_v38 = vld [vmem:[#allocation10 + $0x10] sm:$0xff]  }
  0x63   :  { %v810_v39 = vld [vmem:[#allocation10 + $0x18] sm:$0xff]   ;;  %v811_v40 = vld [vmem:[#allocation10 + $0x20] sm:$0xff]   ;;  %v812_v41 = vld [vmem:[#allocation10 + $0x28] sm:$0xff]  }
  0x64   :  { %697 = vmatpush3.bf16.msra.mxu0 %v784_v3  ;;  %717 = vmatpush3.bf16.msra.mxu1 %v793_v8  ;;  %v618_v42 = vld [vmem:[%s1183_s4] ss:$0 sm:$0xff]  ;;  %v813_v52 = vld [vmem:[#allocation10 + $0x30] sm:$0xff]  }
  0x65   :  { %698 = vmatprep.subr.bf16.mxu0 %v970_v0  ;;  %718 = vmatprep.subr.bf16.mxu1 %v970_v0  ;;  %v814_v53 = vld [vmem:[#allocation10 + $0x38] sm:$0xff]  }
  0x66   :  { %v627_v54 = vld [vmem:[%s1185_s6] ss:$0 sm:$0xff]  ;;  %s972_s6 = smov [#allocation11]  }
  0x67   :  { %s594_s13 = sshll.u32 %s972_s6, 4  ;;  %s595_s13 = int_to_ptr.vmem [resolvable:$true] %s594_s13 }
  0x68   :  { %699 = vmatpush3.bf16.msra.mxu0 %v785_v5  ;;  %719 = vmatpush3.bf16.msra.mxu1 %v794_v10  ;;  %p938_p13 = scmp.lt.s32.totalorder %s595_s13, %s595_s13 }
  0x69   :  { %700 = vmatprep.subr.bf16.mxu0 %v970_v0  ;;  %720 = vmatprep.subr.bf16.mxu1 %v970_v0 }
  0x6c   :  { %701 = vmatpush3.bf16.msra.mxu0 %v786_v7  ;;  %721 = vmatpush3.bf16.msra.mxu1 %v795_v12 }
  0x6d   :  { %702 = vmatprep.subr.bf16.mxu0 %v970_v0  ;;  %722 = vmatprep.subr.bf16.mxu1 %v970_v0 }
  0x70   :  { %703 = vmatpush3.bf16.msra.mxu0 %v787_v9  ;;  %723 = vmatpush3.bf16.msra.mxu1 %v796_v14 }
  0x71   :  { %704 = vmatprep.subr.bf16.mxu0 %v970_v0  ;;  %724 = vmatprep.subr.bf16.mxu1 %v970_v0 }
  0x74   :  { %705 = vmatpush3.bf16.msra.mxu0 %v788_v11  ;;  %725 = vmatpush3.bf16.msra.mxu1 %v797_v16 }
  0x75   :  { %706 = vmatprep.subr.bf16.mxu0 %v970_v0  ;;  %726 = vmatprep.subr.bf16.mxu1 %v970_v0 }
  0x78   :  { %707 = vmatpush3.bf16.msra.mxu0 %v789_v13  ;;  %727 = vmatpush3.bf16.msra.mxu1 %v798_v17 }
  0x79   :  { %732 = vmatprep.subr.bf16.mxu0 %v970_v0  ;;  %752 = vmatprep.subr.bf16.mxu1 %v970_v0 }
  0x7b   :  { %709 = vmatmul.mubr.bf16.vlgmr.msra.gmra.mrb[0].mxu0 %v790_v15 }
  0x7c   :  { %748 = vmatprep.mubr.msk.bf16.mxu0 %vm971_vm0, %v970_v0  ;;  %733 = vmatpush3.bf16.msra.mxu0 %v799_v18 }
  0x7d   :  { %734 = vmatprep.subr.bf16.mxu0 %v970_v0 }
  0x80   :  { %735 = vmatpush3.bf16.msra.mxu0 %v800_v19 }
  0x81   :  { %736 = vmatprep.subr.bf16.mxu0 %v970_v0 }
  0x84   :  { %737 = vmatpush3.bf16.msra.mxu0 %v801_v20 }
  0x85   :  { %738 = vmatprep.subr.bf16.mxu0 %v970_v0 }
  0x88   :  { %739 = vmatpush3.bf16.msra.mxu0 %v802_v21 }
  0x89   :  { %740 = vmatprep.subr.bf16.mxu0 %v970_v0 }
  0x8c   :  { %741 = vmatpush3.bf16.msra.mxu0 %v803_v22 }
  0x8d   :  { %742 = vmatprep.subr.bf16.mxu0 %v970_v0 }
  0x90   :  { %743 = vmatpush3.bf16.msra.mxu0 %v804_v23 }
  0x91   :  { %744 = vmatprep.subr.bf16.mxu0 %v970_v0 }
  0x94   :  { %745 = vmatpush3.bf16.msra.mxu0 %v805_v34 }
  0x95   :  { %746 = vmatprep.subr.bf16.mxu0 %v970_v0 }
  0x98   :  { %747 = vmatpush3.bf16.msra.mxu0 %v806_v35 }
 0x14e   :  { %v215_v25 = vpop.f32.mrb[0].mxu0 }
 0x14f   :  { %v216_v26 = vadd.f32 %v608_v24, %v215_v25  ;;  %v710_v27 = vpop.f32.mrb[1].mxu0 }
 0x150   :  { %v218_v28 = vpop.f32.mrb[2].mxu0 }
 0x151   :  { %v219_v29 = vadd.f32 %v608_v24, %v218_v28  ;;  %v711_v30 = vpop.f32.mrb[3].mxu0  ;;  %v222_v31 = vmax.f32 %v216_v26, 0.0 }
 0x153   :  { %v223_v32 = vmax.f32 %v219_v29, 0.0 }
 0x155   :  { %v224_v33 = vpack.c.bf16 %v223_v32, %v222_v31 }
 0x157   :  { %729 = vmatmul.mubr.bf16.vlgmr.msra.gmra.mrb[0].mxu1 %v224_v33 }
 0x158   :  { %768 = vmatprep.mubr.msk.bf16.mxu1 %vm971_vm0, %v970_v0  ;;  %753 = vmatpush3.bf16.msra.mxu1 %v807_v36 }
 0x159   :  { %754 = vmatprep.subr.bf16.mxu1 %v970_v0 }
 0x15c   :  { %755 = vmatpush3.bf16.msra.mxu1 %v808_v37 }
 0x15d   :  { %756 = vmatprep.subr.bf16.mxu1 %v970_v0 }
 0x160   :  { %757 = vmatpush3.bf16.msra.mxu1 %v809_v38 }
 0x161   :  { %758 = vmatprep.subr.bf16.mxu1 %v970_v0 }
 0x164   :  { %759 = vmatpush3.bf16.msra.mxu1 %v810_v39 }
 0x165   :  { %760 = vmatprep.subr.bf16.mxu1 %v970_v0 }
 0x168   :  { %761 = vmatpush3.bf16.msra.mxu1 %v811_v40 }
 0x169   :  { %762 = vmatprep.subr.bf16.mxu1 %v970_v0 }
 0x16c   :  { %763 = vmatpush3.bf16.msra.mxu1 %v812_v41 }
 0x16d   :  { %764 = vmatprep.subr.bf16.mxu1 %v970_v0 }
 0x170   :  { %765 = vmatpush3.bf16.msra.mxu1 %v813_v52 }
 0x171   :  { %766 = vmatprep.subr.bf16.mxu1 %v970_v0  ;;  %v636_v0 = vld [vmem:[%s1187_s8] ss:$0 sm:$0xff]  ;;  %s933_s8 = scalar_lea.vmem %s595_s13, 128 }
 0x172   :  { %p934_p12 = scmp.ne.s32.totalorder %s595_s13, %s933_s8  ;;  %p939_p0 = scmp.lt.s32.totalorder %s933_s8, %s933_s8 }
 0x174   :  { %767 = vmatpush3.bf16.msra.mxu1 %v814_v53  ;;  %p940_p1 = por %p939_p0, %p938_p13 }
 0x176   :  { %p941_p2 = pnand %p940_p1, %p934_p12 }
 0x22a   :  { %v330_v43 = vpop.f32.mrb[0].mxu1 }
 0x22b   :  { %v331_v44 = vadd.f32 %v618_v42, %v330_v43  ;;  %v730_v45 = vpop.f32.mrb[1].mxu1 }
 0x22c   :  { %v333_v46 = vpop.f32.mrb[2].mxu1 }
 0x22d   :  { %v334_v47 = vadd.f32 %v618_v42, %v333_v46  ;;  %v731_v48 = vpop.f32.mrb[3].mxu1  ;;  %v337_v49 = vmax.f32 %v331_v44, 0.0 }
 0x22f   :  { %v338_v50 = vmax.f32 %v334_v47, 0.0 }
 0x231   :  { %v339_v51 = vpack.c.bf16 %v338_v50, %v337_v49 }
 0x233   :  { %749 = vmatmul.mubr.bf16.vlgmr.msra.gmra.mrb[4].mxu0 %v339_v51 }
 0x306   :  { %v445_v55 = vpop.f32.mrb[4].mxu0 }
 0x307   :  { %v446_v56 = vadd.f32 %v627_v54, %v445_v55  ;;  %v750_v57 = vpop.f32.mrb[5].mxu0 }
 0x308   :  { %v448_v58 = vpop.f32.mrb[6].mxu0 }
 0x309   :  { %v449_v59 = vadd.f32 %v627_v54, %v448_v58  ;;  %v751_v60 = vpop.f32.mrb[7].mxu0  ;;  %v452_v61 = vmax.f32 %v446_v56, 0.0 }
 0x30b   :  { %v453_v62 = vmax.f32 %v449_v59, 0.0 }
 0x30d   :  { %v454_v63 = vpack.c.bf16 %v453_v62, %v452_v61 }
 0x30f   :  { %769 = vmatmul.mubr.bf16.vlgmr.msra.gmra.mrb[4].mxu1 %v454_v63 }
 0x3e2   :  { %v560_v1 = vpop.f32.mrb[4].mxu1 }
 0x3e3   :  { %v561_v2 = vadd.f32 %v636_v0, %v560_v1  ;;  %v770_v3 = vpop.f32.mrb[5].mxu1 }
 0x3e4   :  { %v563_v4 = vpop.f32.mrb[6].mxu1 }
 0x3e5   :  { %v645_v5 = vmul.f32 -1.442695, %v561_v2  ;;  %v564_v6 = vadd.f32 %v636_v0, %v563_v4  ;;  %v771_v7 = vpop.f32.mrb[7].mxu1 }
 0x3e7   :  { %815 = vpow2.f32 %v645_v5  ;;  %v646_v8 = vmul.f32 -1.442695, %v564_v6 }
 0x3e9   :  { %817 = vpow2.f32 %v646_v8 }
 0x3f1   :  { %v816_v9 = vpop.eup %815 }
 0x3f2   :  { %v573_v10 = vadd.f32 1.0, %v816_v9 }
 0x3f3   :  { %v818_v11 = vpop.eup %817 }
 0x3f4   :  { %v574_v12 = vadd.f32 1.0, %v818_v11  ;;  %819 = vrcp.f32 %v573_v10 }
 0x3f6   :  { %821 = vrcp.f32 %v574_v12 }
 0x3fe   :  { %v820_v13 = vpop.eup %819 }
 0x400   :  { %v822_v14 = vpop.eup %821 }
 0x401   :  { %v654_v15 = vpack.c.bf16 %v822_v14, %v820_v13 }
 0x403   :  { %655 = vst [vmem:[#allocation11] sm:$0xff] %v654_v15  }
 0x404   :  { %944 = shalt.err (!%p941_p2)
}
 0x405   :  { %s945_s14 = scalar_lea.hbm %s1188_s9, 128 }
 0x406   :  { %p946_p3 = scmp.ne.s32.totalorder %s1188_s9, %s945_s14  ;;  %p949_p4 = scmp.lt.u32.totalorder %s945_s14, %s1188_s9 }
 0x408   :  { %p951_p5 = pnand %p949_p4, %p946_p3 }
 0x40a   :  { %954 = shalt.err (!%p951_p5)
}
 0x40b   :  { %600 = dma.vmem_to_hbm [thread:$0]  %s595_s13, 128, %s1188_s9, [#allocation4], %s965_s21, %s965_s21, %s966_s22  }
 0x40c   :  { %961 = dma.done.wait [#allocation4], 128  }
 0x40d   :  { %962 = vsyncadd [#allocation4], 4294967168 }
 0x40e   :  { %604 = vsyncpa [#allocation3], 1 }
 0x40f   :  { %605 = vsyncpa [#allocation6], 1 }
 0x410   :  { %606 = vsyncpa [#allocation9], 1 }
 0x411   :  { %607 = vsyncpa [#allocation4], 1 }

</bundles_post_ra>
